<compile_context>
chip_gen: v6e
topology: v6e:2x2x1
jax: 0.10.0
libtpu: 0.0.40
codegen_flags: <defaults>
</compile_context>

<pallas_src>
import jax
import jax.numpy as jnp
from jax import lax
from jax.experimental import pallas as pl
from jax.experimental.pallas import tpu as pltpu

_LANE = 128          # lane width (batch lives on lanes)
_SUB_BF16 = 16       # bf16 sublane granularity (feature-dim padding unit)


def _round_up(v, m):
    return ((v + m - 1) // m) * m


def _default_tile_n_max():
    # v7x: 64 MiB VMEM/TC -> keep batch tiles at 2048. v5e/v6e: 128 MiB -> 4096.
    try:
        kind = jax.devices()[0].device_kind.lower()
    except Exception:
        return 2048
    return 2048 if "v7" in kind else 4096


_TILE_N_MAX = _default_tile_n_max()


def _inference_nn_kernel(x_ref, w1_ref, b1_ref, w2_ref, b2_ref, wh_ref, bh_ref,
                         out_ref):
    # x_ref: [TILE_N, Din_p] f32, natural layout (no wrapper transpose/cast).
    xb = x_ref[...].astype(jnp.bfloat16)
    # Layer 1: [H_p, Din_p] x [TILE_N, Din_p]^T -> [H_p, TILE_N] on the MXU.
    # Result is already in the lane-dense [feature, batch] orientation.
    h = lax.dot_general(w1_ref[...], xb, (((1,), (1,)), ((), ())),
                        preferred_element_type=jnp.float32)
    h = jnp.maximum(h + b1_ref[...], 0.0)            # fused bias + ReLU (f32 VPU)
    # Layer 2: [H_p, H_p] x [H_p, TILE_N] -> [H_p, TILE_N].
    h = jnp.dot(w2_ref[...], h.astype(jnp.bfloat16),
                preferred_element_type=jnp.float32)
    h = jnp.maximum(h + b2_ref[...], 0.0)
    # 1-row heads on VPU/XLU (multiply + cross-sublane reduce) instead of an
    # MXU pass; keeps the stores lane-dense ([1, TILE_N] rows).
    mean_row = jnp.sum(h * wh_ref[:, 0:1], axis=0, keepdims=True)
    sd_row = jnp.sum(h * wh_ref[:, 1:2], axis=0, keepdims=True)
    out_ref[0:1, :] = mean_row + bh_ref[0:1, :]
    out_ref[1:2, :] = sd_row + bh_ref[1:2, :]


def _vmem_limit_bytes(packed, d_in_p, h_p, tile_n):
    # Weights/biases (double-buffered by default), x / out tiles (double-
    # buffered), plus f32 + bf16 copies of the [H_p, TILE_N] hidden activation.
    weight_bytes = sum(int(a.size) * a.dtype.itemsize for a in packed.values())
    x_tile = tile_n * d_in_p * 4
    out_tile = 2 * tile_n * 4
    h_bytes = h_p * tile_n * (4 + 2)
    est = 2 * weight_bytes + 2 * (x_tile + out_tile) + 2 * h_bytes + (4 << 20)
    return int(min(max(est, 16 << 20), 64 << 20))


@jax.jit
def inference_nn_forward(x, packed):
    """x: [N, input_dim] f32. packed: padded params from pack_params."""
    n, d_in = x.shape
    h_p, d_in_p = packed["w1"].shape

    # Batch tile: lane-dense multiple of 128; aim for >=2 grid steps so the
    # "parallel" batch axis can actually be split across v7x's two TensorCores.
    n_min = _round_up(n, _LANE)
    tile_n = min(_TILE_N_MAX, max(_LANE, _round_up(pl.cdiv(n_min, 2), _LANE)))
    n_pad = _round_up(n, tile_n)

    # Only materialize a padded copy of x when shapes don't already align
    # (batch -> tile_n, features -> 16); aligned inputs stream as-is from HBM.
    if (n_pad, d_in_p) != (n, d_in):
        x_in = jnp.zeros((n_pad, d_in_p), x.dtype).at[:n, :d_in].set(x)
    else:
        x_in = x

    # Constant-index specs keep the weights VMEM-resident across grid steps.
    # TODO(synk): single-buffer these (pipeline_mode=pl.Buffered(1)) once that
    # path is confirmed on the deployed JAX version; it halves resident-weight
    # VMEM for large hidden dims (matters for v7x's 64 MiB VMEM).
    const = lambda a: pl.BlockSpec(a.shape, lambda i: (0, 0))

    out = pl.pallas_call(
        _inference_nn_kernel,
        out_shape=jax.ShapeDtypeStruct((2, n_pad), jnp.float32),
        grid=(n_pad // tile_n,),
        in_specs=[
            pl.BlockSpec((tile_n, d_in_p), lambda i: (i, 0)),   # pipelined x tiles
            const(packed["w1"]), const(packed["b1"]),
            const(packed["w2"]), const(packed["b2"]),
            const(packed["wh"]), const(packed["bh"]),
        ],
        out_specs=pl.BlockSpec((2, tile_n), lambda i: (0, i)),
        compiler_params=pltpu.CompilerParams(
            dimension_semantics=("parallel",),   # shard batch axis across TCs
            vmem_limit_bytes=_vmem_limit_bytes(packed, d_in_p, h_p, tile_n),
        ),
    )(x_in, packed["w1"], packed["b1"], packed["w2"], packed["b2"],
      packed["wh"], packed["bh"])

    mean = out[0, :n]      # .reshape(N) in the reference forward
    sd_log = out[1, :n]
    return mean, sd_log


def init_params(key, input_dim, hidden_dim):
    """nn.Linear-style params: weight [out, in], bias [out]."""
    ks = jax.random.split(key, 8)

    def lin(kw, kb, fan_in, fan_out):
        bound = 1.0 / jnp.sqrt(fan_in)
        w = jax.random.uniform(kw, (fan_out, fan_in), jnp.float32, -bound, bound)
        b = jax.random.uniform(kb, (fan_out,), jnp.float32, -bound, bound)
        return w, b

    w1, b1 = lin(ks[0], ks[1], input_dim, hidden_dim)    # FC_input
    w2, b2 = lin(ks[2], ks[3], hidden_dim, hidden_dim)   # FC_input2
    wm, bm = lin(ks[4], ks[5], hidden_dim, 1)            # FC_mean
    ws, bs = lin(ks[6], ks[7], hidden_dim, 1)            # FC_sd_log
    return dict(w1=w1, b1=b1, w2=w2, b2=b2, wm=wm, bm=bm, ws=ws, bs=bs)


def pack_params(p):
    """Pad feature dims only to the bf16 sublane granularity (16), keep the two
    1-row heads as a [H_p, 2] column matrix (VPU heads), bf16 MXU weights."""
    h, d_in = p["w1"].shape
    d_in_p = _round_up(d_in, _SUB_BF16)
    h_p = _round_up(h, _SUB_BF16)

    w1 = jnp.zeros((h_p, d_in_p), jnp.float32).at[:h, :d_in].set(p["w1"])
    b1 = jnp.zeros((h_p, 1), jnp.float32).at[:h, 0].set(p["b1"])
    w2 = jnp.zeros((h_p, h_p), jnp.float32).at[:h, :h].set(p["w2"])
    b2 = jnp.zeros((h_p, 1), jnp.float32).at[:h, 0].set(p["b2"])
    wh = jnp.zeros((h_p, 2), jnp.float32)
    wh = wh.at[:h, 0].set(p["wm"][0]).at[:h, 1].set(p["ws"][0])
    bh = jnp.zeros((2, 1), jnp.float32)
    bh = bh.at[0, 0].set(p["bm"][0]).at[1, 0].set(p["bs"][0])
    return dict(w1=w1.astype(jnp.bfloat16), b1=b1,
                w2=w2.astype(jnp.bfloat16), b2=b2,
                wh=wh, bh=bh)


def reference_forward(x, p):
    """Pure-JAX f32 reference of the PyTorch forward (uses x.shape[0] as N)."""
    h = jnp.maximum(x @ p["w1"].T + p["b1"], 0.0)
    h = jnp.maximum(h @ p["w2"].T + p["b2"], 0.0)
    mean = (h @ p["wm"].T + p["bm"]).reshape(x.shape[0])
    sd_log = (h @ p["ws"].T + p["bs"]).reshape(x.shape[0])
    return mean, sd_log


if __name__ == "__main__":
    N, INPUT_DIM, HIDDEN_DIM = 8, 16, 32

    key = jax.random.PRNGKey(0)
    kx, kp = jax.random.split(key)
    x = jax.random.normal(kx, (N, INPUT_DIM), jnp.float32)
    params = init_params(kp, INPUT_DIM, HIDDEN_DIM)
    packed = pack_params(params)

    mean, sd_log = inference_nn_forward(x, packed)
    jax.block_until_ready((mean, sd_log))

    ref_mean, ref_sd = reference_forward(x, params)
    assert mean.shape == (N,) and sd_log.shape == (N,)
    # bf16 MXU weights with f32 accumulation -> loosened tolerance vs f32 ref.
    assert jnp.allclose(mean, ref_mean, atol=5e-2, rtol=5e-2), (
        f"mean max err {jnp.max(jnp.abs(mean - ref_mean)):.3e}")
    assert jnp.allclose(sd_log, ref_sd, atol=5e-2, rtol=5e-2), (
        f"sd_log max err {jnp.max(jnp.abs(sd_log - ref_sd)):.3e}")

    print("KERNEL_OK")
</pallas_src>

<mosaic_0001>
module attributes {stable_mosaic.version = 11 : i64} {
  func.func @_inference_nn_kernel(%arg0: i32, %arg1: memref<128x16xf32, #tpu.memory_space<vmem>>, %arg2: memref<32x16xbf16, #tpu.memory_space<vmem>>, %arg3: memref<32x1xf32, #tpu.memory_space<vmem>>, %arg4: memref<32x32xbf16, #tpu.memory_space<vmem>>, %arg5: memref<32x1xf32, #tpu.memory_space<vmem>>, %arg6: memref<32x2xf32, #tpu.memory_space<vmem>>, %arg7: memref<2x1xf32, #tpu.memory_space<vmem>>, %arg8: memref<2x128xf32, #tpu.memory_space<vmem>>) attributes {dimension_semantics = [#tpu.dimension_semantics<parallel>], iteration_bounds = array<i64: 1>, scalar_prefetch = 0 : i64, scratch_operands = 0 : i64, tpu.core_type = #tpu.core_type<tc>, window_params = [{transform_indices = @transform_0, window_bounds = array<i64: 128, 16>}, {pipeline_mode = #tpu.pipeline_mode<synchronous>, transform_indices = @transform_1, window_bounds = array<i64: 32, 16>}, {pipeline_mode = #tpu.pipeline_mode<synchronous>, transform_indices = @transform_2, window_bounds = array<i64: 32, 1>}, {pipeline_mode = #tpu.pipeline_mode<synchronous>, transform_indices = @transform_3, window_bounds = array<i64: 32, 32>}, {pipeline_mode = #tpu.pipeline_mode<synchronous>, transform_indices = @transform_4, window_bounds = array<i64: 32, 1>}, {pipeline_mode = #tpu.pipeline_mode<synchronous>, transform_indices = @transform_5, window_bounds = array<i64: 32, 2>}, {pipeline_mode = #tpu.pipeline_mode<synchronous>, transform_indices = @transform_6, window_bounds = array<i64: 2, 1>}, {transform_indices = @transform_7, window_bounds = array<i64: 2, 128>}]} {
    %c0 = arith.constant 0 : index
    %c0_0 = arith.constant 0 : index
    %0 = vector.load %arg1[%c0, %c0_0] : memref<128x16xf32, #tpu.memory_space<vmem>>, vector<128x16xf32>
    %1 = arith.truncf %0 : vector<128x16xf32> to vector<128x16xbf16>
    %c0_1 = arith.constant 0 : index
    %c0_2 = arith.constant 0 : index
    %2 = vector.load %arg2[%c0_1, %c0_2] : memref<32x16xbf16, #tpu.memory_space<vmem>>, vector<32x16xbf16>
    %cst = arith.constant dense<0.000000e+00> : vector<32x128xf32>
    %3 = tpu.matmul %2, %1, %cst {dimension_numbers = #tpu.dot_dimension_numbers<[1], [1], [0], [0], [0, 0, 1, 0], [], []>} : vector<32x16xbf16>, vector<128x16xbf16>, vector<32x128xf32> -> vector<32x128xf32>
    %c0_3 = arith.constant 0 : index
    %c0_4 = arith.constant 0 : index
    %4 = vector.load %arg3[%c0_3, %c0_4] : memref<32x1xf32, #tpu.memory_space<vmem>>, vector<32x1xf32>
    %5 = vector.broadcast %4 : vector<32x1xf32> to vector<32x128xf32>
    %6 = arith.addf %3, %5 : vector<32x128xf32>
    %cst_5 = arith.constant 0.000000e+00 : f32
    %7 = vector.broadcast %cst_5 : f32 to vector<32x128xf32>
    %8 = arith.maximumf %6, %7 : vector<32x128xf32>
    %c0_6 = arith.constant 0 : index
    %c0_7 = arith.constant 0 : index
    %9 = vector.load %arg4[%c0_6, %c0_7] : memref<32x32xbf16, #tpu.memory_space<vmem>>, vector<32x32xbf16>
    %10 = arith.truncf %8 : vector<32x128xf32> to vector<32x128xbf16>
    %cst_8 = arith.constant dense<0.000000e+00> : vector<32x128xf32>
    %11 = tpu.matmul %9, %10, %cst_8 {dimension_numbers = #tpu.dot_dimension_numbers<[1], [0], [0], [1], [0, 0, 1, 1], [], []>} : vector<32x32xbf16>, vector<32x128xbf16>, vector<32x128xf32> -> vector<32x128xf32>
    %c0_9 = arith.constant 0 : index
    %c0_10 = arith.constant 0 : index
    %12 = vector.load %arg5[%c0_9, %c0_10] : memref<32x1xf32, #tpu.memory_space<vmem>>, vector<32x1xf32>
    %13 = vector.broadcast %12 : vector<32x1xf32> to vector<32x128xf32>
    %14 = arith.addf %11, %13 : vector<32x128xf32>
    %cst_11 = arith.constant 0.000000e+00 : f32
    %15 = vector.broadcast %cst_11 : f32 to vector<32x128xf32>
    %16 = arith.maximumf %14, %15 : vector<32x128xf32>
    %c0_12 = arith.constant 0 : index
    %c0_13 = arith.constant 0 : index
    %17 = vector.load %arg6[%c0_12, %c0_13] : memref<32x2xf32, #tpu.memory_space<vmem>>, vector<32x1xf32>
    %18 = vector.broadcast %17 : vector<32x1xf32> to vector<32x128xf32>
    %19 = arith.mulf %16, %18 : vector<32x128xf32>
    %cst_14 = arith.constant dense<0.000000e+00> : vector<128xf32>
    %20 = vector.multi_reduction <add>, %19, %cst_14 [0] : vector<32x128xf32> to vector<128xf32>
    %21 = vector.shape_cast %20 : vector<128xf32> to vector<1x128xf32>
    %c0_15 = arith.constant 0 : index
    %c1 = arith.constant 1 : index
    %22 = vector.load %arg6[%c0_15, %c1] : memref<32x2xf32, #tpu.memory_space<vmem>>, vector<32x1xf32>
    %23 = vector.broadcast %22 : vector<32x1xf32> to vector<32x128xf32>
    %24 = arith.mulf %16, %23 : vector<32x128xf32>
    %cst_16 = arith.constant dense<0.000000e+00> : vector<128xf32>
    %25 = vector.multi_reduction <add>, %24, %cst_16 [0] : vector<32x128xf32> to vector<128xf32>
    %26 = vector.shape_cast %25 : vector<128xf32> to vector<1x128xf32>
    %c0_17 = arith.constant 0 : index
    %c0_18 = arith.constant 0 : index
    %27 = vector.load %arg7[%c0_17, %c0_18] : memref<2x1xf32, #tpu.memory_space<vmem>>, vector<1x1xf32>
    %28 = vector.broadcast %27 : vector<1x1xf32> to vector<1x128xf32>
    %29 = arith.addf %21, %28 : vector<1x128xf32>
    %c0_19 = arith.constant 0 : index
    %c0_20 = arith.constant 0 : index
    %30 = vector.load %arg8[%c0_19, %c0_20] : memref<2x128xf32, #tpu.memory_space<vmem>>, vector<1x128xf32>
    tpu.vector_store %arg8[%c0_19, %c0_20], %29 {strides = array<i32>} : memref<2x128xf32, #tpu.memory_space<vmem>>, vector<1x128xf32>,
    %c1_21 = arith.constant 1 : index
    %c0_22 = arith.constant 0 : index
    %31 = vector.load %arg7[%c1_21, %c0_22] : memref<2x1xf32, #tpu.memory_space<vmem>>, vector<1x1xf32>
    %32 = vector.broadcast %31 : vector<1x1xf32> to vector<1x128xf32>
    %33 = arith.addf %26, %32 : vector<1x128xf32>
    %c1_23 = arith.constant 1 : index
    %c0_24 = arith.constant 0 : index
    %34 = vector.load %arg8[%c1_23, %c0_24] : memref<2x128xf32, #tpu.memory_space<vmem>>, vector<1x128xf32>
    tpu.vector_store %arg8[%c1_23, %c0_24], %33 {strides = array<i32>} : memref<2x128xf32, #tpu.memory_space<vmem>>, vector<1x128xf32>,
    return
  }
  func.func @transform_0(%arg0: i32) -> (i32, i32) {
    %c0_i32 = arith.constant 0 : i32
    %c0_i32_0 = arith.constant 0 : i32
    return %arg0, %c0_i32 : i32, i32
  }
  func.func @transform_1(%arg0: i32) -> (i32, i32) {
    %c0_i32 = arith.constant 0 : i32
    %c0_i32_0 = arith.constant 0 : i32
    %c0_i32_1 = arith.constant 0 : i32
    return %c0_i32, %c0_i32_0 : i32, i32
  }
  func.func @transform_2(%arg0: i32) -> (i32, i32) {
    %c0_i32 = arith.constant 0 : i32
    %c0_i32_0 = arith.constant 0 : i32
    %c0_i32_1 = arith.constant 0 : i32
    return %c0_i32, %c0_i32_0 : i32, i32
  }
  func.func @transform_3(%arg0: i32) -> (i32, i32) {
    %c0_i32 = arith.constant 0 : i32
    %c0_i32_0 = arith.constant 0 : i32
    %c0_i32_1 = arith.constant 0 : i32
    return %c0_i32, %c0_i32_0 : i32, i32
  }
  func.func @transform_4(%arg0: i32) -> (i32, i32) {
    %c0_i32 = arith.constant 0 : i32
    %c0_i32_0 = arith.constant 0 : i32
    %c0_i32_1 = arith.constant 0 : i32
    return %c0_i32, %c0_i32_0 : i32, i32
  }
  func.func @transform_5(%arg0: i32) -> (i32, i32) {
    %c0_i32 = arith.constant 0 : i32
    %c0_i32_0 = arith.constant 0 : i32
    %c0_i32_1 = arith.constant 0 : i32
    return %c0_i32, %c0_i32_0 : i32, i32
  }
  func.func @transform_6(%arg0: i32) -> (i32, i32) {
    %c0_i32 = arith.constant 0 : i32
    %c0_i32_0 = arith.constant 0 : i32
    %c0_i32_1 = arith.constant 0 : i32
    return %c0_i32, %c0_i32_0 : i32, i32
  }
  func.func @transform_7(%arg0: i32) -> (i32, i32) {
    %c0_i32 = arith.constant 0 : i32
    %c0_i32_0 = arith.constant 0 : i32
    return %c0_i32, %arg0 : i32, i32
  }
}

</mosaic_0001>

<bundles_post_ra>
// kernel: inference_nn_forward.1
= control target key start
LH: loop header
LB: loop body
LE: loop exit
PB: predicated region body
PF: predicated region fallthrough
CT: control target
= control target key end

     0   :  { %vm89_vm0 = vcmask 130048   ;;  %v429_v3 = vmov 0   ;;  %vm213_vm1 = vcmask 261120   ;;  %v430_v46 = vmov 1   ;;  %s603_s0 = inlined_call_operand.vmem [shape: f32[128,16], index: 0, kind: input, shape index: {}]   ;;  %s604_s1 = inlined_call_operand.vmem [shape: bf16[32,16], index: 1, kind: input, shape index: {}]   ;;  %s605_s2 = inlined_call_operand.vmem [shape: f32[32,1], index: 2, kind: input, shape index: {}]   ;;  %s606_s4 = inlined_call_operand.vmem [shape: f32[32,1], index: 4, kind: input, shape index: {}]   ;;  %s607_s5 = inlined_call_operand.vmem [shape: f32[32,2], index: 5, kind: input, shape index: {}]   ;;  %s608_s3 = inlined_call_operand.vmem [shape: bf16[32,32], index: 3, kind: input, shape index: {}]   ;;  %s609_s6 = inlined_call_operand.vmem [shape: f32[2,1], index: 6, kind: input, shape index: {}]   ;;  %s610_s7 = inlined_call_operand.vmem [shape: f32[2,128], index: 7, kind: output, shape index: {}]  }
   0x1   :  { %v41_v0 = vld [vmem:[%s603_s0 + $0x70] sm:$0xff]  ;;  %v42_v1 = vld [vmem:[%s603_s0 + $0x78] sm:$0xff]  ;;  %v39_v2 = vld [vmem:[%s603_s0 + $0x60] sm:$0xff]  ;;  %419 = vset.pattern.permute.xlu0 %v429_v3  ;;  %420 = vset.pattern.permute.xlu1 %v429_v3 }
   0x2   :  { %v50_v4 = vpack.c.bf16 %v42_v1, %v41_v0  ;;  %v40_v5 = vld [vmem:[%s603_s0 + $0x68] sm:$0xff]  ;;  %v37_v8 = vld [vmem:[%s603_s0 + $0x50] sm:$0xff]  ;;  %v38_v9 = vld [vmem:[%s603_s0 + $0x58] sm:$0xff] }
   0x3   :  { %v49_v6 = vpack.c.bf16 %v40_v5, %v39_v2  ;;  %v425_v10 = vld [vmem:[%s604_s1] sm:$0xff]   ;;  %v57_v11 = vld [vmem:[%s605_s2 + $0x10] sm:$0xff]  ;;  %v48_v14 = vpack.c.bf16 %v38_v9, %v37_v8  ;;  %v58_v15 = vld [vmem:[%s605_s2 + $0x18] sm:$0xff] }
   0x4   :  { %409 = vmatprep.subr.msk.bf16.mxu0 %vm89_vm0, %v50_v4  ;;  %v118_v7 = vsel %vm89_vm0, %v50_v4, 0  ;;  %397 = vmatprep.mubr.msk.bf16.mxu0 %vm89_vm0, %v425_v10  ;;  %v55_v12 = vld [vmem:[%s605_s2] sm:$0xff]  ;;  %v56_v16 = vld [vmem:[%s605_s2 + $0x8] sm:$0xff]  ;;  %v181_v23 = vld [vmem:[%s606_s4 + $0x10] sm:$0xff] }
   0x5   :  { %382 = vmatpush3.bf16.xpose.msra.mxu0 %v118_v7  ;;  %71 = vperm.xlu0 %419, %v57_v11   ;;  %v115_v13 = vsel %vm89_vm0, %v49_v6, 0  ;;  %v179_v17 = vld [vmem:[%s606_s4] sm:$0xff]  ;;  %v36_v19 = vld [vmem:[%s603_s0 + $0x48] sm:$0xff]  ;;  %v112_v21 = vsel %vm89_vm0, %v48_v14, 0  ;;  %v182_v24 = vld [vmem:[%s606_s4 + $0x18] sm:$0xff] }
   0x6   :  { %410 = vmatprep.subr.msk.bf16.mxu0 %vm89_vm0, %v49_v6  ;;  %61 = vperm.xlu1 %420, %v55_v12   ;;  %v35_v18 = vld [vmem:[%s603_s0 + $0x40] sm:$0xff]  ;;  %v180_v20 = vld [vmem:[%s606_s4 + $0x8] sm:$0xff]  ;;  %v33_v26 = vld [vmem:[%s603_s0 + $0x30] sm:$0xff] }
   0x7   :  { %v47_v22 = vpack.c.bf16 %v36_v19, %v35_v18  ;;  %v273_v25 = vld [vmem:[%s607_s5] sm:$0xff]  ;;  %v34_v27 = vld [vmem:[%s603_s0 + $0x38] sm:$0xff]  ;;  %v274_v28 = vld [vmem:[%s607_s5 + $0x8] sm:$0xff] }
   0x8   :  { %v46_v30 = vpack.c.bf16 %v34_v27, %v33_v26  ;;  %v31_v31 = vld [vmem:[%s603_s0 + $0x20] sm:$0xff]  ;;  %v32_v32 = vld [vmem:[%s603_s0 + $0x28] sm:$0xff]  ;;  %v29_v35 = vld [vmem:[%s603_s0 + $0x10] sm:$0xff] }
   0x9   :  { %76 = vperm.xlu0 %419, %v58_v15   ;;  %v109_v29 = vsel %vm89_vm0, %v47_v22, 0  ;;  %v45_v34 = vpack.c.bf16 %v32_v32, %v31_v31  ;;  %v30_v36 = vld [vmem:[%s603_s0 + $0x18] sm:$0xff]  ;;  %v27_v39 = vld [vmem:[%s603_s0] sm:$0xff]  ;;  %v28_v40 = vld [vmem:[%s603_s0 + $0x8] sm:$0xff] }
   0xa   :  { %66 = vperm.xlu1 %420, %v56_v16   ;;  %v106_v33 = vsel %vm89_vm0, %v46_v30, 0  ;;  %v44_v38 = vpack.c.bf16 %v30_v36, %v29_v35  ;;  %v43_v42 = vpack.c.bf16 %v28_v40, %v27_v39  ;;  %v426_v44 = vld [vmem:[%s604_s1 + $0x8] sm:$0xff]   ;;  %v427_v45 = vld [vmem:[%s608_s3] sm:$0xff]   ;;  %v275_v47 = vld [vmem:[%s607_s5 + $0x10] sm:$0xff] }
   0xb   :  { %v103_v37 = vsel %vm89_vm0, %v45_v34, 0  ;;  %405 = vmatprep.mubr.msk.bf16.mxu1 %vm213_vm1, %v427_v45  ;;  %v276_v48 = vld [vmem:[%s607_s5 + $0x18] sm:$0xff]  ;;  %v339_v49 = vld [vmem:[%s609_s6] sm:$0x1]  ;;  %v347_v50 = vld [vmem:[%s609_s6 + $0x1] sm:$0x1] }
   0xc   :  { %v100_v41 = vsel %vm89_vm0, %v44_v38, 0  ;;  %v97_v43 = vsel %vm89_vm0, %v43_v42, 0  ;;  %v428_v5 = vld [vmem:[%s608_s3 + $0x8] sm:$0xff]  }
   0xd   :  { %384 = vmatpush3.bf16.xpose.msra.mxu0 %v115_v13  ;;  %185 = vperm.xlu0 %419, %v179_v17  }
   0xe   :  { %411 = vmatprep.subr.msk.bf16.mxu0 %vm89_vm0, %v48_v14  ;;  %190 = vperm.xlu1 %420, %v180_v20  }
  0x11   :  { %195 = vperm.xlu0 %419, %v181_v23  }
  0x12   :  { %200 = vperm.xlu1 %420, %v182_v24  }
  0x15   :  { %386 = vmatpush3.bf16.xpose.msra.mxu0 %v112_v21  ;;  %279 = vperm.xlu0 %419, %v273_v25  }
  0x16   :  { %412 = vmatprep.subr.msk.bf16.mxu0 %vm89_vm0, %v47_v22  ;;  %284 = vperm.xlu1 %420, %v274_v28  }
  0x19   :  { %421 = vset.pattern.permute.xlu0 %v430_v46 }
  0x1a   :  { %422 = vset.pattern.permute.xlu1 %v430_v46  ;;  %311 = vperm.xlu0 %421, %v273_v25  }
  0x1b   :  { %315 = vperm.xlu1 %422, %v274_v28  }
  0x1d   :  { %388 = vmatpush3.bf16.xpose.msra.mxu0 %v109_v29 }
  0x1e   :  { %413 = vmatprep.subr.msk.bf16.mxu0 %vm89_vm0, %v46_v30  ;;  %319 = vperm.xlu0 %421, %v275_v47  }
  0x1f   :  { %423 = vset.pattern.permute.xlu1 %v429_v3 }
  0x20   :  { %289 = vperm.xlu1 %423, %v275_v47  }
  0x22   :  { %323 = vperm.xlu0 %421, %v276_v48  }
  0x24   :  { %294 = vperm.xlu1 %423, %v276_v48  }
  0x25   :  { %390 = vmatpush3.bf16.xpose.msra.mxu0 %v106_v33 }
  0x26   :  { %414 = vmatprep.subr.msk.bf16.mxu0 %vm89_vm0, %v45_v34  ;;  %424 = vset.pattern.permute.xlu0 %v429_v3 }
  0x27   :  { %350 = vperm.xlu0 %424, %v347_v50  }
  0x28   :  { %342 = vperm.xlu1 %423, %v339_v49  }
  0x2d   :  { %392 = vmatpush3.bf16.xpose.msra.mxu0 %v103_v37 }
  0x2e   :  { %415 = vmatprep.subr.msk.bf16.mxu0 %vm89_vm0, %v44_v38 }
  0x35   :  { %394 = vmatpush3.bf16.xpose.msra.mxu0 %v100_v41 }
  0x36   :  { %416 = vmatprep.subr.msk.bf16.mxu0 %vm89_vm0, %v43_v42 }
  0x3d   :  { %396 = vmatpush3.bf16.xpose.msra.mxu0 %v97_v43 }
  0x44   :  { %398 = vmatmul.mubr.msk.bf16.vlgmr.msra.gmra.mxu0 %vm89_vm0, %v426_v44 }
  0x80   :  { %v72_v51 = vpop.permute.xlu0 %71 }
  0x81   :  { %v62_v52 = vpop.permute.xlu1 %61 }
  0x84   :  { %v77_v56 = vpop.permute.xlu0 %76 }
  0x85   :  { %v67_v60 = vpop.permute.xlu1 %66 }
  0x88   :  { %v186_v6 = vpop.permute.xlu0 %185 }
  0x89   :  { %v191_v7 = vpop.permute.xlu1 %190 }
  0x8c   :  { %v196_v8 = vpop.permute.xlu0 %195 }
  0x8d   :  { %v201_v9 = vpop.permute.xlu1 %200 }
  0x90   :  { %v280_v10 = vpop.permute.xlu0 %279 }
  0x91   :  { %v285_v11 = vpop.permute.xlu1 %284 }
  0x95   :  { %v312_v13 = vpop.permute.xlu0 %311 }
  0x96   :  { %v316_v14 = vpop.permute.xlu1 %315 }
  0x99   :  { %v320_v23 = vpop.permute.xlu0 %319 }
  0x9b   :  { %v290_v24 = vpop.permute.xlu1 %289 }
  0x9d   :  { %v324_v36 = vpop.permute.xlu0 %323 }
  0x9f   :  { %v295_v37 = vpop.permute.xlu1 %294 }
 0x104   :  { %v399_v53 = vpop.f32.mrf.mxu0 }
 0x105   :  { %v163_v55 = vadd.f32 %v399_v53, %v72_v51 }
 0x106   :  { %v154_v54 = vpop.f32.mrf.mxu0 }
 0x107   :  { %v155_v58 = vadd.f32 %v154_v54, %v62_v52  ;;  %v171_v62 = vmax.f32 %v163_v55, 0.0  ;;  %v351_v54 = vpop.permute.xlu0 %350 }
 0x108   :  { %v400_v57 = vpop.f32.mrf.mxu0 }
 0x109   :  { %v166_v59 = vadd.f32 %v400_v57, %v77_v56  ;;  %v169_v1 = vmax.f32 %v155_v58, 0.0  ;;  %v343_v57 = vpop.permute.xlu1 %342 }
 0x10a   :  { %v157_v61 = vpop.f32.mrf.mxu0 }
 0x10b   :  { %v172_v63 = vmax.f32 %v166_v59, 0.0  ;;  %v158_v0 = vadd.f32 %v157_v61, %v67_v60 }
 0x10d   :  { %v170_v2 = vmax.f32 %v158_v0, 0.0  ;;  %v178_v4 = vpack.c.bf16 %v172_v63, %v171_v62 }
 0x10f   :  { %v177_v3 = vpack.c.bf16 %v170_v2, %v169_v1  ;;  %401 = vmatprep.subr.bf16.mxu1 %v178_v4 }
 0x110   :  { %402 = vmatpush3.bf16.msra.mxu1 %v178_v4 }
 0x111   :  { %403 = vmatprep.subr.bf16.mxu1 %v177_v3 }
 0x114   :  { %404 = vmatpush3.bf16.msra.mxu1 %v177_v3 }
 0x117   :  { %406 = vmatmul.mubr.msk.bf16.vlgmr.msra.gmra.mxu1 %vm213_vm1, %v428_v5 }
 0x1d7   :  { %v407_v12 = vpop.f32.mrf.mxu1 }
 0x1d8   :  { %v263_v18 = vadd.f32 %v407_v12, %v196_v8 }
 0x1d9   :  { %v254_v15 = vpop.f32.mrf.mxu1 }
 0x1da   :  { %v255_v16 = vadd.f32 %v254_v15, %v186_v6  ;;  %v271_v25 = vmax.f32 %v263_v18, 0.0 }
 0x1db   :  { %v408_v17 = vpop.f32.mrf.mxu1 }
 0x1dc   :  { %v269_v19 = vmax.f32 %v255_v16, 0.0  ;;  %v266_v21 = vadd.f32 %v408_v17, %v201_v9  ;;  %v328_v32 = vmul.f32 %v320_v23, %v271_v25  ;;  %v299_v33 = vmul.f32 %v290_v24, %v271_v25 }
 0x1dd   :  { %v257_v20 = vpop.f32.mrf.mxu1 }
 0x1de   :  { %v258_v22 = vadd.f32 %v257_v20, %v191_v7  ;;  %v297_v27 = vmul.f32 %v280_v10, %v269_v19  ;;  %v326_v28 = vmul.f32 %v312_v13, %v269_v19  ;;  %v272_v29 = vmax.f32 %v266_v21, 0.0 }
 0x1e0   :  { %v270_v26 = vmax.f32 %v258_v22, 0.0  ;;  %v329_v38 = vmul.f32 %v324_v36, %v272_v29  ;;  %v300_v39 = vmul.f32 %v295_v37, %v272_v29 }
 0x1e2   :  { %v298_v30 = vmul.f32 %v285_v11, %v270_v26  ;;  %v327_v31 = vmul.f32 %v316_v14, %v270_v26 }
 0x1e4   :  { %v301_v34 = vadd.f32 %v298_v30, %v297_v27  ;;  %v330_v35 = vadd.f32 %v327_v31, %v326_v28 }
 0x1e6   :  { %v302_v40 = vadd.f32 %v301_v34, %v299_v33  ;;  %v331_v41 = vadd.f32 %v330_v35, %v328_v32 }
 0x1e8   :  { %v303_v42 = vadd.f32 %v302_v40, %v300_v39  ;;  %v332_v43 = vadd.f32 %v331_v41, %v329_v38 }
 0x1ea   :  { %v304_v44 = vrot.slane %v303_v42, 4  ;;  %v333_v45 = vrot.slane %v332_v43, 4 }
 0x1ec   :  { %v305_v46 = vadd.f32 %v304_v44, %v303_v42  ;;  %v334_v47 = vadd.f32 %v333_v45, %v332_v43 }
 0x1ee   :  { %v306_v48 = vrot.slane %v305_v46, 2  ;;  %v335_v49 = vrot.slane %v334_v47, 2 }
 0x1f0   :  { %v307_v50 = vadd.f32 %v306_v48, %v305_v46  ;;  %v336_v51 = vadd.f32 %v335_v49, %v334_v47 }
 0x1f2   :  { %v308_v52 = vrot.slane %v307_v50, 1  ;;  %v337_v53 = vrot.slane %v336_v51, 1 }
 0x1f4   :  { %v309_v55 = vadd.f32 %v308_v52, %v307_v50  ;;  %v338_v56 = vadd.f32 %v337_v53, %v336_v51 }
 0x1f6   :  { %v345_v58 = vadd.f32 %v343_v57, %v309_v55  ;;  %v353_v59 = vadd.f32 %v351_v54, %v338_v56 }
 0x1f8   :  { %346 = vst [vmem:[%s610_s7] sm:$0x1] %v345_v58  ;;  %354 = vst [vmem:[%s610_s7 + $0x1] sm:$0x1] %v353_v59 }

</bundles_post_ra>
